<compile_context>
chip_gen: v5e
topology: v5e:2x2
jax: 0.10.0
libtpu: 0.0.40
codegen_flags: <defaults>
</compile_context>

<pallas_src>
import math
import functools

import jax
import jax.numpy as jnp
from jax.experimental import pallas as pl
from jax.experimental.pallas import tpu as pltpu


def _ocr_ptr_kernel(q_ref, k_ref, mask_ref, m_ref, vk_ref, vq_ref, o_ref,
                    *, bb, tq, tk, h, compute_dtype):
    # q_ref   : (BB, Tq_p, H)  compute_dtype     k_ref : (BB, Tk_p, H) compute_dtype
    # mask_ref: (BB, 1, Tk_p)  f32  (holds (1-mask)*-1e4 + bq.bk/sqrt(QK))
    # m_ref   : (H, H) compute_dtype  = Wq^T Wk / sqrt(QK)
    # vk_ref  : (1, H) f32            = bq Wk / sqrt(QK)
    # vq_ref  : (H, 1) compute_dtype  = Wq^T bk / sqrt(QK)
    # o_ref   : (BB, Tq_p, Tk_p)
    q_in = q_ref[...].reshape(bb * tq, h)            # sublane-aligned collapse

    # Single "projection": q @ M, with the key-side bias vk folded in so the
    # score einsum produces term1 + term3 in one contraction.
    qm = jnp.dot(q_in, m_ref[...], preferred_element_type=jnp.float32)
    qm = qm + vk_ref[...]                            # (BB*Tq_p, H) f32

    # Per-query bias term  q @ (Wq^T bk / sqrt(QK))  — tiny matvec.
    qb = jnp.dot(q_in, vq_ref[...],
                 preferred_element_type=jnp.float32)  # (BB*Tq_p, 1) f32

    qm = qm.astype(compute_dtype).reshape(bb, tq, h)

    # Batched (q@M) k^T contracting the shared H dim (no transpose materialized).
    scores = jnp.einsum("bqd,bkd->bqk", qm, k_ref[...],
                        preferred_element_type=jnp.float32)  # (BB, Tq_p, Tk_p)

    scores = scores + qb.reshape(bb, tq, 1) + mask_ref[...]
    o_ref[...] = scores.astype(o_ref.dtype)


def _round_up(x, m):
    return ((x + m - 1) // m) * m


@functools.lru_cache(maxsize=1)
def _tpu_generation_info():
    """(vmem_budget_bytes, vmem_limit_bytes_or_None, mxu_rows, multi_tc)."""
    kind = ""
    try:
        kind = jax.devices()[0].device_kind.lower()
    except Exception:
        pass
    try:
        cap = int(pltpu.get_tpu_info().vmem_capacity_bytes)
    except Exception:
        cap = 64 * 1024 * 1024                      # conservative fallback
    is_v5e = ("v5e" in kind) or ("v5 lite" in kind) or ("v5lite" in kind)
    multi_tc = "v7" in kind                         # v7x: 2 TensorCores / chip
    if is_v5e:
        # Default scoped limit is 16 MiB and the MXU is 128x128; keep headroom
        # and do not raise the scoped VMEM limit.
        return 12 * 1024 * 1024, None, 128, multi_tc
    budget = min(3 * cap // 8, 28 * 1024 * 1024)    # ~24 MiB on v7x, 28 MiB on v6e
    limit = int(min(5 * cap // 8, 64 * 1024 * 1024))  # ~40 MiB on v7x, 64 MiB on v6e
    return budget, limit, 256, multi_tc


def ocr_ptr_net(query_inputs, key_inputs, attention_mask, params,
                query_key_size=None, *, compute_dtype=jnp.bfloat16,
                out_dtype=jnp.float32):
    """Pallas implementation of OcrPtrNet.forward."""
    wq, bq, wk, bk = params["wq"], params["bq"], params["wk"], params["bk"]
    if query_key_size is None:
        query_key_size = wq.shape[0]

    assert attention_mask.ndim == 2
    squeeze_result = False
    if query_inputs.ndim == 2:
        query_inputs = query_inputs[:, None, :]      # (B, 1, H)
        squeeze_result = True

    B, Tq, H = query_inputs.shape
    _, Tk, _ = key_inputs.shape

    itemsize = jnp.dtype(compute_dtype).itemsize
    out_size = jnp.dtype(out_dtype).itemsize
    sub = 8 * (4 // itemsize)                        # sublane tile: 8 (f32) / 16 (bf16)

    # ---- algebraic elimination of the key projection (f32, wrapper-side) ----
    scale = 1.0 / math.sqrt(query_key_size)
    wq32 = wq.astype(jnp.float32)
    wk32 = wk.astype(jnp.float32)
    bq32 = bq.astype(jnp.float32)
    bk32 = bk.astype(jnp.float32)
    m_mat = ((wq32.T @ wk32) * scale).astype(compute_dtype)          # (H, H)
    vk_row = ((bq32 @ wk32) * scale).reshape(1, H).astype(jnp.float32)  # (1, H)
    vq_col = ((wq32.T @ bk32) * scale).reshape(H, 1).astype(compute_dtype)  # (H, 1)
    const_c = jnp.dot(bq32, bk32) * scale                            # scalar

    # ---- padding: sublane-aligned Tq, lane-dense Tk ----
    Tq_p = _round_up(Tq, sub)
    Tk_p = _round_up(Tk, 128)

    # ---- generation-aware batching ----
    budget, vmem_limit, mxu_rows, multi_tc = _tpu_generation_info()
    BB = max(1, -(-mxu_rows // Tq_p))                # fill the MXU rows
    BB = min(BB, B)
    if multi_tc and B >= 2:
        BB = min(BB, -(-B // 2))                     # >= 2 grid steps for 2 TCs

    def _footprint(bb):
        act = bb * (Tq_p + Tk_p) * H * itemsize              # q, k tiles
        msk = bb * 8 * Tk_p * 4                              # mask tile (sublane pad)
        out = bb * Tq_p * Tk_p * out_size
        w = H * H * itemsize + 8 * H * 4 + H * 128 * itemsize  # M, vk, vq (VMEM tiles)
        tmp = bb * Tq_p * (H * (4 + itemsize) + Tk_p * 4)    # in-kernel intermediates
        return 2 * (act + msk + out + w) + tmp               # double-buffered tiles

    while BB > 1 and _footprint(BB) > budget:
        BB = max(1, BB // 2)

    B_p = _round_up(B, BB)

    # Zero-pad activations; padded key columns / batch rows get mask = -10000
    # (their score columns/rows are sliced off below).
    q_pad = jnp.zeros((B_p, Tq_p, H), compute_dtype)
    q_pad = q_pad.at[:B, :Tq, :].set(query_inputs.astype(compute_dtype))
    k_pad = jnp.zeros((B_p, Tk_p, H), compute_dtype)
    k_pad = k_pad.at[:B, :Tk, :].set(key_inputs.astype(compute_dtype))

    ext = (1.0 - attention_mask.astype(jnp.float32)) * (-10000.0) + const_c
    ext_pad = jnp.full((B_p, 1, Tk_p), -10000.0, jnp.float32)
    ext_pad = ext_pad.at[:B, 0, :Tk].set(ext)

    kernel = functools.partial(
        _ocr_ptr_kernel, bb=BB, tq=Tq_p, tk=Tk_p, h=H,
        compute_dtype=compute_dtype)

    scores = pl.pallas_call(
        kernel,
        out_shape=jax.ShapeDtypeStruct((B_p, Tq_p, Tk_p), out_dtype),
        grid_spec=pltpu.PrefetchScalarGridSpec(
            num_scalar_prefetch=0,
            grid=(B_p // BB,),
            in_specs=[
                pl.BlockSpec((BB, Tq_p, H), lambda b: (b, 0, 0)),   # queries
                pl.BlockSpec((BB, Tk_p, H), lambda b: (b, 0, 0)),   # keys
                pl.BlockSpec((BB, 1, Tk_p), lambda b: (b, 0, 0)),   # additive mask (+c)
                pl.BlockSpec((H, H), lambda b: (0, 0)),             # M = Wq^T Wk * s
                pl.BlockSpec((1, H), lambda b: (0, 0)),             # vk = bq Wk * s
                pl.BlockSpec((H, 1), lambda b: (0, 0)),             # vq = Wq^T bk * s
            ],
            out_specs=pl.BlockSpec((BB, Tq_p, Tk_p), lambda b: (b, 0, 0)),
        ),
        compiler_params=pltpu.CompilerParams(
            dimension_semantics=("parallel",),
            vmem_limit_bytes=vmem_limit),
    )(q_pad, k_pad, ext_pad, m_mat, vk_row, vq_col)

    scores = scores[:B, :Tq, :Tk]
    if squeeze_result:
        scores = scores[:, 0, :]                     # (B, Tk)
    return scores


def _reference(query_inputs, key_inputs, attention_mask, params, query_key_size):
    """Pure-JAX reference mirroring the PyTorch forward."""
    wq, bq, wk, bk = params["wq"], params["bq"], params["wk"], params["bk"]
    ext = (1.0 - attention_mask) * -10000.0
    ext = ext[:, None, :]
    squeeze = query_inputs.ndim == 2
    q_in = query_inputs[:, None, :] if squeeze else query_inputs
    q = q_in @ wq.T + bq
    k = key_inputs @ wk.T + bk
    s = jnp.einsum("bqd,bkd->bqk", q, k) / math.sqrt(query_key_size)
    s = s + ext
    return s[:, 0, :] if squeeze else s


if __name__ == "__main__":
    # Small deterministic shapes.
    B, Tq, Tk, H = 2, 8, 16, 32
    hidden_size = H
    query_key_size = H            # default path: query_key_size = hidden_size

    key = jax.random.PRNGKey(0)
    k1, k2, k3, k4, k5, k6, k7 = jax.random.split(key, 7)

    bound = 1.0 / math.sqrt(hidden_size)
    params = {
        "wq": jax.random.uniform(k1, (query_key_size, hidden_size),
                                 jnp.float32, -bound, bound),
        "bq": jax.random.uniform(k2, (query_key_size,), jnp.float32, -bound, bound),
        "wk": jax.random.uniform(k3, (query_key_size, hidden_size),
                                 jnp.float32, -bound, bound),
        "bk": jax.random.uniform(k4, (query_key_size,), jnp.float32, -bound, bound),
    }

    query_inputs = jax.random.normal(k5, (B, Tq, H), jnp.float32)
    key_inputs = jax.random.normal(k6, (B, Tk, H), jnp.float32)
    attention_mask = (jax.random.uniform(k7, (B, Tk)) > 0.3).astype(jnp.float32)

    ref = _reference(query_inputs, key_inputs, attention_mask, params,
                     query_key_size)

    # 3-D query path, bf16 compute (default).
    out_bf16 = jax.block_until_ready(
        ocr_ptr_net(query_inputs, key_inputs, attention_mask, params,
                    query_key_size))
    assert out_bf16.shape == (B, Tq, Tk)
    assert jnp.allclose(out_bf16, ref, atol=1e-1, rtol=5e-2)

    # 3-D query path, f32 compute (tight check of the kernel structure).
    out_f32 = jax.block_until_ready(
        ocr_ptr_net(query_inputs, key_inputs, attention_mask, params,
                    query_key_size, compute_dtype=jnp.float32))
    assert jnp.allclose(out_f32, ref, atol=1e-4, rtol=1e-4)

    # 2-D query path (single decoding step -> squeeze).
    ref2 = _reference(query_inputs[:, 0, :], key_inputs, attention_mask,
                      params, query_key_size)
    out2 = jax.block_until_ready(
        ocr_ptr_net(query_inputs[:, 0, :], key_inputs, attention_mask,
                    params, query_key_size))
    assert out2.shape == (B, Tk)
    assert jnp.allclose(out2, ref2, atol=1e-1, rtol=5e-2)

    out2_f32 = jax.block_until_ready(
        ocr_ptr_net(query_inputs[:, 0, :], key_inputs, attention_mask,
                    params, query_key_size, compute_dtype=jnp.float32))
    assert jnp.allclose(out2_f32, ref2, atol=1e-4, rtol=1e-4)

    print("KERNEL_OK")
</pallas_src>

<mosaic_0001>
module attributes {stable_mosaic.version = 11 : i64} {
  func.func @_ocr_ptr_kernel(%arg0: i32, %arg1: memref<2x16x32xbf16, #tpu.memory_space<vmem>>, %arg2: memref<2x128x32xbf16, #tpu.memory_space<vmem>>, %arg3: memref<2x1x128xf32, #tpu.memory_space<vmem>>, %arg4: memref<32x32xbf16, #tpu.memory_space<vmem>>, %arg5: memref<1x32xf32, #tpu.memory_space<vmem>>, %arg6: memref<32x1xbf16, #tpu.memory_space<vmem>>, %arg7: memref<2x16x128xf32, #tpu.memory_space<vmem>>) attributes {dimension_semantics = [#tpu.dimension_semantics<parallel>], iteration_bounds = array<i64: 1>, scalar_prefetch = 0 : i64, scratch_operands = 0 : i64, tpu.core_type = #tpu.core_type<tc>, window_params = [{transform_indices = @transform_0, window_bounds = array<i64: 2, 16, 32>}, {transform_indices = @transform_1, window_bounds = array<i64: 2, 128, 32>}, {transform_indices = @transform_2, window_bounds = array<i64: 2, 1, 128>}, {pipeline_mode = #tpu.pipeline_mode<synchronous>, transform_indices = @transform_3, window_bounds = array<i64: 32, 32>}, {pipeline_mode = #tpu.pipeline_mode<synchronous>, transform_indices = @transform_4, window_bounds = array<i64: 1, 32>}, {pipeline_mode = #tpu.pipeline_mode<synchronous>, transform_indices = @transform_5, window_bounds = array<i64: 32, 1>}, {transform_indices = @transform_6, window_bounds = array<i64: 2, 16, 128>}]} {
    %c0 = arith.constant 0 : index
    %c0_0 = arith.constant 0 : index
    %c0_1 = arith.constant 0 : index
    %0 = vector.load %arg1[%c0, %c0_0, %c0_1] : memref<2x16x32xbf16, #tpu.memory_space<vmem>>, vector<2x16x32xbf16>
    %1 = vector.shape_cast %0 : vector<2x16x32xbf16> to vector<32x32xbf16>
    %c0_2 = arith.constant 0 : index
    %c0_3 = arith.constant 0 : index
    %2 = vector.load %arg4[%c0_2, %c0_3] : memref<32x32xbf16, #tpu.memory_space<vmem>>, vector<32x32xbf16>
    %cst = arith.constant dense<0.000000e+00> : vector<32x32xf32>
    %3 = tpu.matmul %1, %2, %cst {dimension_numbers = #tpu.dot_dimension_numbers<[1], [0], [0], [1], [0, 0, 1, 1], [], []>} : vector<32x32xbf16>, vector<32x32xbf16>, vector<32x32xf32> -> vector<32x32xf32>
    %c0_4 = arith.constant 0 : index
    %c0_5 = arith.constant 0 : index
    %4 = vector.load %arg5[%c0_4, %c0_5] : memref<1x32xf32, #tpu.memory_space<vmem>>, vector<1x32xf32>
    %5 = vector.broadcast %4 : vector<1x32xf32> to vector<32x32xf32>
    %6 = arith.addf %3, %5 : vector<32x32xf32>
    %c0_6 = arith.constant 0 : index
    %c0_7 = arith.constant 0 : index
    %7 = vector.load %arg6[%c0_6, %c0_7] : memref<32x1xbf16, #tpu.memory_space<vmem>>, vector<32x1xbf16>
    %cst_8 = arith.constant dense<0.000000e+00> : vector<32x1xf32>
    %8 = tpu.matmul %1, %7, %cst_8 {dimension_numbers = #tpu.dot_dimension_numbers<[1], [0], [0], [1], [0, 0, 1, 1], [], []>} : vector<32x32xbf16>, vector<32x1xbf16>, vector<32x1xf32> -> vector<32x1xf32>
    %9 = arith.truncf %6 : vector<32x32xf32> to vector<32x32xbf16>
    %10 = vector.shape_cast %9 : vector<32x32xbf16> to vector<2x16x32xbf16>
    %c0_9 = arith.constant 0 : index
    %c0_10 = arith.constant 0 : index
    %c0_11 = arith.constant 0 : index
    %11 = vector.load %arg2[%c0_9, %c0_10, %c0_11] : memref<2x128x32xbf16, #tpu.memory_space<vmem>>, vector<2x128x32xbf16>
    "tpu.trace_start"() <{level = 10 : i32, message = "bqd,bkd->bqk"}> : () -> ()
    %cst_12 = arith.constant dense<0.000000e+00> : vector<2x16x128xf32>
    %12 = tpu.matmul %10, %11, %cst_12 {dimension_numbers = #tpu.dot_dimension_numbers<[2], [2], [1], [1], [0, 0, 0, 1, 1, 1], [0], [0]>} : vector<2x16x32xbf16>, vector<2x128x32xbf16>, vector<2x16x128xf32> -> vector<2x16x128xf32>
    "tpu.trace_stop"() : () -> ()
    %13 = vector.shape_cast %8 : vector<32x1xf32> to vector<2x16x1xf32>
    %14 = vector.broadcast %13 : vector<2x16x1xf32> to vector<2x16x128xf32>
    %15 = arith.addf %12, %14 : vector<2x16x128xf32>
    %c0_13 = arith.constant 0 : index
    %c0_14 = arith.constant 0 : index
    %c0_15 = arith.constant 0 : index
    %16 = vector.load %arg3[%c0_13, %c0_14, %c0_15] : memref<2x1x128xf32, #tpu.memory_space<vmem>>, vector<2x1x128xf32>
    %17 = vector.broadcast %16 : vector<2x1x128xf32> to vector<2x16x128xf32>
    %18 = arith.addf %15, %17 : vector<2x16x128xf32>
    %c0_16 = arith.constant 0 : index
    %c0_17 = arith.constant 0 : index
    %c0_18 = arith.constant 0 : index
    %19 = vector.load %arg7[%c0_16, %c0_17, %c0_18] : memref<2x16x128xf32, #tpu.memory_space<vmem>>, vector<2x16x128xf32>
    tpu.vector_store %arg7[%c0_16, %c0_17, %c0_18], %18 {strides = array<i32>} : memref<2x16x128xf32, #tpu.memory_space<vmem>>, vector<2x16x128xf32>,
    return
  }
  func.func @transform_0(%arg0: i32) -> (i32, i32, i32) {
    %c0_i32 = arith.constant 0 : i32
    %c0_i32_0 = arith.constant 0 : i32
    %c0_i32_1 = arith.constant 0 : i32
    return %arg0, %c0_i32, %c0_i32_0 : i32, i32, i32
  }
  func.func @transform_1(%arg0: i32) -> (i32, i32, i32) {
    %c0_i32 = arith.constant 0 : i32
    %c0_i32_0 = arith.constant 0 : i32
    %c0_i32_1 = arith.constant 0 : i32
    return %arg0, %c0_i32, %c0_i32_0 : i32, i32, i32
  }
  func.func @transform_2(%arg0: i32) -> (i32, i32, i32) {
    %c0_i32 = arith.constant 0 : i32
    %c0_i32_0 = arith.constant 0 : i32
    %c0_i32_1 = arith.constant 0 : i32
    return %arg0, %c0_i32, %c0_i32_0 : i32, i32, i32
  }
  func.func @transform_3(%arg0: i32) -> (i32, i32) {
    %c0_i32 = arith.constant 0 : i32
    %c0_i32_0 = arith.constant 0 : i32
    %c0_i32_1 = arith.constant 0 : i32
    return %c0_i32, %c0_i32_0 : i32, i32
  }
  func.func @transform_4(%arg0: i32) -> (i32, i32) {
    %c0_i32 = arith.constant 0 : i32
    %c0_i32_0 = arith.constant 0 : i32
    %c0_i32_1 = arith.constant 0 : i32
    return %c0_i32, %c0_i32_0 : i32, i32
  }
  func.func @transform_5(%arg0: i32) -> (i32, i32) {
    %c0_i32 = arith.constant 0 : i32
    %c0_i32_0 = arith.constant 0 : i32
    %c0_i32_1 = arith.constant 0 : i32
    return %c0_i32, %c0_i32_0 : i32, i32
  }
  func.func @transform_6(%arg0: i32) -> (i32, i32, i32) {
    %c0_i32 = arith.constant 0 : i32
    %c0_i32_0 = arith.constant 0 : i32
    %c0_i32_1 = arith.constant 0 : i32
    return %arg0, %c0_i32, %c0_i32_0 : i32, i32, i32
  }
}

</mosaic_0001>

<bundles_post_ra>
// kernel: tpu_custom_call.1
= control target key start
LH: loop header
LB: loop body
LE: loop exit
PB: predicated region body
PF: predicated region fallthrough
CT: control target
= control target key end

     0   :  { %vm59_vm0 = vcmask 261120   ;;  %s672_s0 = inlined_call_operand.vmem [shape: bf16[2,16,32], index: 0, kind: input, shape index: {}]   ;;  %s673_s1 = inlined_call_operand.vmem [shape: bf16[2,128,32], index: 1, kind: input, shape index: {}]   ;;  %s674_s2 = inlined_call_operand.vmem [shape: f32[2,1,128], index: 2, kind: input, shape index: {}]   ;;  %s675_s3 = inlined_call_operand.vmem [shape: bf16[32,32], index: 3, kind: input, shape index: {}]   ;;  %s676_s4 = inlined_call_operand.vmem [shape: f32[1,32], index: 4, kind: input, shape index: {}]   ;;  %s677_s5 = inlined_call_operand.vmem [shape: bf16[32,1], index: 5, kind: input, shape index: {}]   ;;  %s678_s6 = inlined_call_operand.hbm [shape: f32[2,16,128], index: 6, kind: output, shape index: {}]  }
   0x1   :  { %v479_v0 = vld [vmem:[%s675_s3 + $0x8] sm:$0xff]  ;;  %v478_v2 = vld [vmem:[%s675_s3] sm:$0xff]  ;;  %v489_v3 = vld [vmem:[%s673_s1 + $0x38] sm:$0xff] }
   0x2   :  { %v481_v1 = vld [vmem:[%s677_s5 + $0x8] sm:$0xff]  ;;  %72 = vmatpush.bf16.msra.mxu0 %v479_v0  ;;  %v480_v4 = vld [vmem:[%s677_s5] sm:$0xff]  ;;  %v497_v5 = vld [vmem:[%s673_s1 + $0x78] sm:$0xff]  ;;  %v246_v6 = vsel %vm59_vm0, %v489_v3, 0 }
   0x3   :  { %107 = vmatpush.bf16.msra.mxu1 %v481_v1  ;;  %v476_v7 = vld [vmem:[%s672_s0] sm:$0xff]  ;;  %248 = vmatpush.bf16.xpose.msra.mxu2 %v246_v6  ;;  %v332_v8 = vsel %vm59_vm0, %v497_v5, 0  ;;  %v488_v9 = vld [vmem:[%s673_s1 + $0x30] sm:$0xff] }
   0x4   :  { %334 = vmatpush.bf16.xpose.msra.mxu3 %v332_v8  ;;  %v496_v10 = vld [vmem:[%s673_s1 + $0x70] sm:$0xff] }
   0x6   :  { %73 = vmatpush.bf16.msra.mxu0 %v478_v2 }
   0x7   :  { %108 = vmatpush.bf16.msra.mxu1 %v480_v4 }
   0x8   :  { %11 = vsyncpa [#allocation3], 0  ;;  %v243_v11 = vsel %vm59_vm0, %v488_v9, 0  ;;  %v329_v12 = vsel %vm59_vm0, %v496_v10, 0  ;;  %v487_v13 = vld [vmem:[%s673_s1 + $0x28] sm:$0xff]  ;;  %v486_v18 = vld [vmem:[%s673_s1 + $0x20] sm:$0xff] }
   0x9   :  { %398 = vmatmul.msk.bf16.vlgmr.msra.gmra.mxu0 %vm59_vm0, %v476_v7  ;;  %v495_v14 = vld [vmem:[%s673_s1 + $0x68] sm:$0xff]  ;;  %v240_v15 = vsel %vm59_vm0, %v487_v13, 0  ;;  %v494_v19 = vld [vmem:[%s673_s1 + $0x60] sm:$0xff]  ;;  %v237_v20 = vsel %vm59_vm0, %v486_v18, 0  ;;  %v485_v22 = vld [vmem:[%s673_s1 + $0x18] sm:$0xff]  ;;  %v533_v37 = vmov 0  }
   0xa   :  { %408 = vmatmul.msk.bf16.vlgmr.msra.gmra.mxu1 %vm59_vm0, %v476_v7  ;;  %v326_v16 = vsel %vm59_vm0, %v495_v14, 0  ;;  %v477_v17 = vld [vmem:[%s672_s0 + $0x8] sm:$0xff]  ;;  %v323_v21 = vsel %vm59_vm0, %v494_v19, 0  ;;  %v234_v23 = vsel %vm59_vm0, %v485_v22, 0  ;;  %v484_v24 = vld [vmem:[%s673_s1 + $0x10] sm:$0xff]  ;;  %v493_v27 = vld [vmem:[%s673_s1 + $0x58] sm:$0xff]  ;;  %502 = vset.pattern.permute.xlu0 %v533_v37 }
   0xb   :  { %249 = vmatpush.bf16.xpose.msra.mxu2 %v243_v11  ;;  %v231_v25 = vsel %vm59_vm0, %v484_v24, 0  ;;  %v483_v26 = vld [vmem:[%s673_s1 + $0x8] sm:$0xff]  ;;  %v320_v29 = vsel %vm59_vm0, %v493_v27, 0  ;;  %v482_v30 = vld [vmem:[%s673_s1] sm:$0xff]  ;;  %v492_v31 = vld [vmem:[%s673_s1 + $0x50] sm:$0xff]  ;;  %503 = vset.pattern.permute.xlu1 %v533_v37  ;;  %s534_s16 = smov [#allocation2]  }
   0xc   :  { %335 = vmatpush.bf16.xpose.msra.mxu3 %v329_v12  ;;  %v228_v28 = vsel %vm59_vm0, %v483_v26, 0  ;;  %v225_v32 = vsel %vm59_vm0, %v482_v30, 0  ;;  %v317_v33 = vsel %vm59_vm0, %v492_v31, 0  ;;  %v491_v34 = vld [vmem:[%s673_s1 + $0x48] sm:$0xff]  ;;  %v490_v36 = vld [vmem:[%s673_s1 + $0x40] sm:$0xff]  ;;  %s368_s17 = sshll.u32 %s534_s16, 4  ;;  %s369_s17 = int_to_ptr.vmem [resolvable:$true] %s368_s17 }
   0xd   :  { %v314_v35 = vsel %vm59_vm0, %v491_v34, 0  ;;  %v311_v38 = vsel %vm59_vm0, %v490_v36, 0  ;;  %v504_v40 = vld [vmem:[%s676_s4] ss:$0 sm:$0xff]  ;;  %v506_v8 = vld [vmem:[%s674_s2 + $0x1] ss:$0 sm:$0xff] }
   0xe   :  { %v505_v63 = vld [vmem:[%s674_s2] ss:$0 sm:$0xff]  ;;  %s370_s20 = sshll.u32 %s678_s6, 4  ;;  %s535_s21 = smov 128   ;;  %s371_s20 = int_to_ptr.hbm [resolvable:$true] %s370_s20 }
   0xf   :  { %s536_s22 = smov 8  }
  0x13   :  { %250 = vmatpush.bf16.xpose.msra.mxu2 %v240_v15 }
  0x14   :  { %336 = vmatpush.bf16.xpose.msra.mxu3 %v326_v16 }
  0x19   :  { %399 = vmatmul.msk.bf16.gmra.mxu0 %vm59_vm0, %v477_v17 }
  0x1a   :  { %409 = vmatmul.msk.bf16.gmra.mxu1 %vm59_vm0, %v477_v17 }
  0x1b   :  { %251 = vmatpush.bf16.xpose.msra.mxu2 %v237_v20 }
  0x1c   :  { %337 = vmatpush.bf16.xpose.msra.mxu3 %v323_v21 }
  0x23   :  { %252 = vmatpush.bf16.xpose.msra.mxu2 %v234_v23 }
  0x24   :  { %338 = vmatpush.bf16.xpose.msra.mxu3 %v320_v29 }
  0x2b   :  { %253 = vmatpush.bf16.xpose.msra.mxu2 %v231_v25 }
  0x2c   :  { %339 = vmatpush.bf16.xpose.msra.mxu3 %v317_v33 }
  0x33   :  { %254 = vmatpush.bf16.xpose.msra.mxu2 %v228_v28 }
  0x34   :  { %340 = vmatpush.bf16.xpose.msra.mxu3 %v314_v35 }
  0x3b   :  { %255 = vmatpush.bf16.xpose.msra.mxu2 %v225_v32 }
  0x3c   :  { %341 = vmatpush.bf16.xpose.msra.mxu3 %v311_v38 }
  0x86   :  { %v75_v39 = vpop.f32.mrf.mxu0 }
  0x87   :  { %v110_v41 = vpop.f32.mrf.mxu1  ;;  %v76_v42 = vadd.f32 %v504_v40, %v75_v39 }
  0x88   :  { %158 = vperm.xlu0 %502, %v110_v41  }
  0x89   :  { %v120_v44 = vpack.c.bf16 %v76_v42, %v76_v42 }
  0x8b   :  { %v178_v48 = vunpack.c.l.b16 %v120_v44 }
  0x8e   :  { %v77_v43 = vpop.f32.mrf.mxu0 }
  0x8f   :  { %v78_v45 = vadd.f32 %v504_v40, %v77_v43  ;;  %v112_v46 = vpop.f32.mrf.mxu1 }
  0x90   :  { %163 = vperm.xlu0 %502, %v112_v46  }
  0x91   :  { %v121_v47 = vpack.c.bf16 %v78_v45, %v78_v45 }
  0x93   :  { %v179_v49 = vunpack.c.l.b16 %v121_v47 }
  0x95   :  { %v180_v50 = vpack.c.b16 %v179_v49, %v178_v48 }
  0x96   :  { %v80_v51 = vpop.f32.mrf.mxu0 }
  0x97   :  { %442 = vmatmul.msk.bf16.vlgmr.msra.gmra.mxu2 %vm59_vm0, %v180_v50  ;;  %v115_v52 = vpop.f32.mrf.mxu1  ;;  %v81_v53 = vadd.f32 %v504_v40, %v80_v51 }
  0x98   :  { %168 = vperm.xlu1 %503, %v115_v52  }
  0x99   :  { %v122_v55 = vpack.c.bf16 %v81_v53, %v81_v53 }
  0x9b   :  { %v264_v59 = vunpack.c.l.b16 %v122_v55 }
  0x9e   :  { %v82_v54 = vpop.f32.mrf.mxu0 }
  0x9f   :  { %v83_v56 = vadd.f32 %v504_v40, %v82_v54  ;;  %v117_v57 = vpop.f32.mrf.mxu1 }
  0xa0   :  { %173 = vperm.xlu1 %503, %v117_v57  }
  0xa1   :  { %v123_v58 = vpack.c.bf16 %v83_v56, %v83_v56 }
  0xa3   :  { %v265_v60 = vunpack.c.l.b16 %v123_v58 }
  0xa5   :  { %v266_v61 = vpack.c.b16 %v265_v60, %v264_v59 }
  0xa7   :  { %475 = vmatmul.msk.bf16.vlgmr.msra.gmra.mxu3 %vm59_vm0, %v266_v61 }
  0xfa   :  { %v159_v62 = vpop.permute.xlu0 %158 }
 0x102   :  { %v164_v3 = vpop.permute.xlu0 %163 }
 0x10a   :  { %v169_v7 = vpop.permute.xlu1 %168 }
 0x112   :  { %v174_v12 = vpop.permute.xlu1 %173 }
 0x11a   :  { %v257_v0 = vpop.f32.mrf.mxu2 }
 0x11b   :  { %v258_v1 = vadd.f32 %v257_v0, %v159_v62 }
 0x11d   :  { %v356_v2 = vadd.f32 %v505_v63, %v258_v1 }
 0x11f   :  { %360 = vst [vmem:[#allocation2] sm:$0xff] %v356_v2 }
 0x122   :  { %v259_v4 = vpop.f32.mrf.mxu2 }
 0x123   :  { %v260_v5 = vadd.f32 %v259_v4, %v164_v3 }
 0x125   :  { %v357_v6 = vadd.f32 %v505_v63, %v260_v5 }
 0x127   :  { %361 = vst [vmem:[#allocation2 + $0x8] sm:$0xff] %v357_v6 }
 0x12a   :  { %v343_v9 = vpop.f32.mrf.mxu3 }
 0x12b   :  { %v344_v10 = vadd.f32 %v343_v9, %v169_v7 }
 0x12d   :  { %v358_v11 = vadd.f32 %v506_v8, %v344_v10 }
 0x12f   :  { %362 = vst [vmem:[#allocation2 + $0x10] sm:$0xff] %v358_v11 }
 0x132   :  { %v345_v13 = vpop.f32.mrf.mxu3 }
 0x133   :  { %v346_v14 = vadd.f32 %v345_v13, %v174_v12 }
 0x135   :  { %v359_v15 = vadd.f32 %v506_v8, %v346_v14 }
 0x137   :  { %363 = vst [vmem:[#allocation2 + $0x18] sm:$0xff] %v359_v15 }
 0x138   :  { %376 = dma.vmem_to_hbm [thread:$0]  %s369_s17, 512, %s371_s20, [#allocation3], %s535_s21, %s535_s21, %s536_s22  }
 0x139   :  { %531 = dma.done.wait [#allocation3], 512  }
 0x13a   :  { %532 = vsyncadd [#allocation3], 4294966784 }
 0x13b   :  { %381 = vsyncpa [#allocation3], 1 }

</bundles_post_ra>
